<compile_context>
chip_gen: v5e
topology: v5e:2x2
jax: 0.10.0
libtpu: 0.0.40
codegen_flags: <defaults>
</compile_context>

<pallas_src>
import functools

import jax
import jax.numpy as jnp
from jax.experimental import pallas as pl
from jax.experimental.pallas import tpu as pltpu

LANE = 128       # TPU lane width; padded feature dims are multiples of this.
ROW_BLOCK = 8    # sublane-aligned batch tile (grid axis is "parallel").


# ----------------------------------------------------------------------------
# Fused Pallas kernel (one launch; grid over 8-row batch tiles)
# ----------------------------------------------------------------------------
def _fused_forward_kernel(xu_ref, xl_ref, xs_ref,
                          tenc_w_ref, tenc_b_ref, tdec_w_ref, tdec_b_ref,
                          pw_ref, ps_ref, pc_ref,
                          senc_w_ref, senc_b_ref,
                          w1_ref, b1_ref, w2_ref, b2_ref,
                          recon_u_ref, recon_l_ref, pred_l_ref, pred_s_ref):
    bf = jnp.bfloat16
    tenc_w = tenc_w_ref[...]
    tenc_b = tenc_b_ref[...]
    tdec_w = tdec_w_ref[...]
    tdec_b = tdec_b_ref[...]

    def tgt_autoenc(x):
        lat = (jnp.dot(x.astype(bf), tenc_w,
                       preferred_element_type=jnp.float32) + tenc_b)     # (rb,128) f32
        rec = (jnp.dot(lat.astype(bf), tdec_w,
                       preferred_element_type=jnp.float32) + tdec_b)     # (rb, D)  f32
        return lat, rec

    def proto_pred(z):
        # folded prototype-distance + linear predictor (exact algebra):
        #   pred = -2 * z @ W_eff + (z.z) * s_eff + c_eff
        z2 = jnp.sum(z * z, axis=1, keepdims=True)                       # f32 (rb,1)
        return (-2.0 * jnp.dot(z.astype(bf), pw_ref[...],
                               preferred_element_type=jnp.float32)
                + z2 * ps_ref[...] + pc_ref[...])                        # (rb,128) f32

    # ---- target prototype-autoencoder: unlabelled + labelled batches -------
    _, recon_u = tgt_autoenc(xu_ref[...])
    recon_u_ref[...] = recon_u
    lat_l, recon_l = tgt_autoenc(xl_ref[...])
    recon_l_ref[...] = recon_l
    pred_l_ref[...] = proto_pred(lat_l)

    # ---- source encoder -> transfer MLP -> target proto predictor ----------
    lat_s = (jnp.dot(xs_ref[...].astype(bf), senc_w_ref[...],
                     preferred_element_type=jnp.float32) + senc_b_ref[...])
    h = jnp.maximum(jnp.dot(lat_s.astype(bf), w1_ref[...],
                            preferred_element_type=jnp.float32) + b1_ref[...],
                    0.0)                                                  # (rb,256) f32
    z_t = (jnp.dot(h.astype(bf), w2_ref[...],
                   preferred_element_type=jnp.float32) + b2_ref[...])     # (rb,128) f32
    pred_s_ref[...] = proto_pred(z_t)


def _run_fused_forward(p, x_unlabel, x_label, x_source):
    B, D = x_unlabel.shape
    rb = ROW_BLOCK if (B % ROW_BLOCK == 0) else B
    nb = B // rb
    ncls_pad = p["pred_w_eff"].shape[1]

    def row_spec(cols):
        return pl.BlockSpec((rb, cols), lambda i: (i, 0))

    def const_spec(arr):
        r, c = arr.shape
        return pl.BlockSpec((r, c), lambda i: (0, 0))   # resident across grid

    weight_keys = ("tgt_enc_w", "tgt_enc_b", "tgt_dec_w", "tgt_dec_b",
                   "pred_w_eff", "pred_s_eff", "pred_c_eff",
                   "src_enc_w", "src_enc_b",
                   "xfer_w1", "xfer_b1", "xfer_w2", "xfer_b2")
    in_specs = [row_spec(D), row_spec(D), row_spec(D)] + \
               [const_spec(p[k]) for k in weight_keys]
    out_specs = (row_spec(D), row_spec(D), row_spec(ncls_pad), row_spec(ncls_pad))
    out_shape = (jax.ShapeDtypeStruct((B, D), jnp.float32),
                 jax.ShapeDtypeStruct((B, D), jnp.float32),
                 jax.ShapeDtypeStruct((B, ncls_pad), jnp.float32),
                 jax.ShapeDtypeStruct((B, ncls_pad), jnp.float32))

    return pl.pallas_call(
        _fused_forward_kernel,
        grid=(nb,),
        in_specs=in_specs,
        out_specs=out_specs,
        out_shape=out_shape,
        compiler_params=pltpu.CompilerParams(
            dimension_semantics=("parallel",)),   # v7x: shard row-blocks on 2 TCs
    )(x_unlabel, x_label, x_source,
      p["tgt_enc_w"], p["tgt_enc_b"], p["tgt_dec_w"], p["tgt_dec_b"],
      p["pred_w_eff"], p["pred_s_eff"], p["pred_c_eff"],
      p["src_enc_w"], p["src_enc_b"],
      p["xfer_w1"], p["xfer_b1"], p["xfer_w2"], p["xfer_b2"])


# ----------------------------------------------------------------------------
# Parameters (synthetic sub-models: Linear encoder/decoder/predictor + protos)
# ----------------------------------------------------------------------------
def make_raw_params(key, *, in_dim, latent_src, latent_tgt, hidden,
                    n_protos_src, n_protos_tgt, n_classes):
    ks = jax.random.split(key, 14)
    s = 0.05
    n = lambda k, shape: s * jax.random.normal(k, shape, jnp.float32)
    return {
        "src_enc_w": n(ks[0], (in_dim, latent_src)),
        "src_enc_b": n(ks[1], (latent_src,)),
        "src_protos": jax.random.normal(ks[2], (n_protos_src, latent_src),
                                        jnp.float32),
        "xfer_w1": n(ks[3], (latent_src, hidden)),
        "xfer_b1": n(ks[4], (hidden,)),
        "xfer_w2": n(ks[5], (hidden, latent_tgt)),
        "xfer_b2": n(ks[6], (latent_tgt,)),
        "tgt_enc_w": n(ks[7], (in_dim, latent_tgt)),
        "tgt_enc_b": n(ks[8], (latent_tgt,)),
        "tgt_dec_w": n(ks[9], (latent_tgt, in_dim)),
        "tgt_dec_b": n(ks[10], (in_dim,)),
        "tgt_protos": jax.random.normal(ks[11], (n_protos_tgt, latent_tgt),
                                        jnp.float32),
        "tgt_pred_w": n(ks[12], (n_protos_tgt, n_classes)),
        "tgt_pred_b": n(ks[13], (n_classes,)),
    }


def _pad_last(a, to):
    return jnp.pad(a, [(0, 0)] * (a.ndim - 1) + [(0, to - a.shape[-1])])


def _pad_rows(a, to):
    return jnp.pad(a, [(0, to - a.shape[0]), (0, 0)])


def _round_to_lane(dim):
    return ((dim + LANE - 1) // LANE) * LANE


def prepare_params(raw):
    """Pad feature dims to 128 lanes (lane-dense stores), cast MXU weights to
    bf16, fold the prototype layer + predictor into one affine, and precompute
    the input-independent source-prototype transfer."""
    lat_s = _round_to_lane(raw["src_enc_w"].shape[1])
    lat_t = _round_to_lane(raw["tgt_enc_w"].shape[1])
    ncls = _round_to_lane(raw["tgt_pred_w"].shape[1])
    bf = jnp.bfloat16

    # Folded prototype-distance + predictor:  pred(z) = -2 z W_eff + z2 s + c
    protos = raw["tgt_protos"]                              # (P, lt) f32
    pred_w = raw["tgt_pred_w"]                              # (P, C)  f32
    w_eff = protos.T @ pred_w                               # (lt, C) f32
    s_eff = jnp.sum(pred_w, axis=0)[None, :]                # (1, C)  f32
    c_eff = (jnp.sum(protos * protos, axis=1) @ pred_w)[None, :] \
        + raw["tgt_pred_b"][None, :]                        # (1, C)  f32

    # transfer_layer(source prototypes): weights-only => host-side constant.
    h = jnp.maximum(raw["src_protos"] @ raw["xfer_w1"] + raw["xfer_b1"], 0.0)
    recon_target_proto = h @ raw["xfer_w2"] + raw["xfer_b2"]  # (Psrc, lt) f32

    return {
        # target autoencoder
        "tgt_enc_w": _pad_last(raw["tgt_enc_w"], lat_t).astype(bf),
        "tgt_enc_b": _pad_last(raw["tgt_enc_b"][None, :], lat_t),
        "tgt_dec_w": _pad_rows(raw["tgt_dec_w"], lat_t).astype(bf),
        "tgt_dec_b": raw["tgt_dec_b"][None, :],
        # folded proto layer + predictor (zero-padded lanes stay exact zeros)
        "pred_w_eff": _pad_last(_pad_rows(w_eff, lat_t), ncls).astype(bf),
        "pred_s_eff": _pad_last(s_eff, ncls),
        "pred_c_eff": _pad_last(c_eff, ncls),
        # source encoder + transfer MLP
        "src_enc_w": _pad_last(raw["src_enc_w"], lat_s).astype(bf),
        "src_enc_b": _pad_last(raw["src_enc_b"][None, :], lat_s),
        "xfer_w1": _pad_rows(raw["xfer_w1"], lat_s).astype(bf),
        "xfer_b1": raw["xfer_b1"][None, :],
        "xfer_w2": _pad_last(raw["xfer_w2"], lat_t).astype(bf),
        "xfer_b2": _pad_last(raw["xfer_b2"][None, :], lat_t),
        # precomputed constant output (f32, unpadded)
        "recon_target_proto": recon_target_proto,
    }


# ----------------------------------------------------------------------------
# TransferModel.forward (inference-path compute only)
# ----------------------------------------------------------------------------
def transfer_model_forward(params, xb_target_unlabel, xb_source, xb_target_label,
                           *, n_classes):
    B = xb_target_unlabel.shape[0]
    x_unlabel = xb_target_unlabel.reshape(B, -1)
    x_label = xb_target_label.reshape(B, -1)
    x_source = xb_source.reshape(B, -1)

    recon_u, recon_l, pred_l, pred_s = _run_fused_forward(
        params, x_unlabel, x_label, x_source)

    return (x_unlabel,                         # input_target_unlabel
            recon_u,                           # recon_target_unlabel
            pred_s[:, :n_classes],             # prediction_source
            params["recon_target_proto"],      # recon_target_proto (constant)
            x_label,                           # input_target_label
            recon_l,                           # recon_target_label
            pred_l[:, :n_classes])             # prediction_target_label


# ----------------------------------------------------------------------------
# Pure-f32 jnp reference (module semantics, unfolded) for a sanity check
# ----------------------------------------------------------------------------
def _reference_forward(raw, xb_target_unlabel, xb_source, xb_target_label):
    B = xb_target_unlabel.shape[0]
    x_u = xb_target_unlabel.reshape(B, -1)
    x_l = xb_target_label.reshape(B, -1)
    x_s = xb_source.reshape(B, -1)
    protos_sq = jnp.sum(raw["tgt_protos"] ** 2, axis=1)[None, :]

    def proto_pred(z):
        d = (jnp.sum(z * z, axis=1, keepdims=True) + protos_sq
             - 2.0 * z @ raw["tgt_protos"].T)
        return d @ raw["tgt_pred_w"] + raw["tgt_pred_b"]

    def tgt_model(x):
        lat = x @ raw["tgt_enc_w"] + raw["tgt_enc_b"]
        rec = lat @ raw["tgt_dec_w"] + raw["tgt_dec_b"]
        return lat, rec

    _, rec_u = tgt_model(x_u)
    lat_l, rec_l = tgt_model(x_l)
    pred_l = proto_pred(lat_l)

    lat_s = x_s @ raw["src_enc_w"] + raw["src_enc_b"]
    z = (jnp.maximum(lat_s @ raw["xfer_w1"] + raw["xfer_b1"], 0.0)
         @ raw["xfer_w2"] + raw["xfer_b2"])
    pred_s = proto_pred(z)

    h = jnp.maximum(raw["src_protos"] @ raw["xfer_w1"] + raw["xfer_b1"], 0.0)
    recon_proto = h @ raw["xfer_w2"] + raw["xfer_b2"]

    return (x_u, rec_u, pred_s, recon_proto, x_l, rec_l, pred_l)


if __name__ == "__main__":
    B, C, H, W = 16, 1, 16, 16          # B=16 -> two 8-row blocks on the grid
    in_dim = C * H * W                  # 256 -> lane-dense recon stores
    latent_src = latent_tgt = 32
    hidden = 256
    n_protos_src = n_protos_tgt = 16
    n_classes = 10

    key = jax.random.PRNGKey(0)
    k_params, k_u, k_s, k_l = jax.random.split(key, 4)

    raw = make_raw_params(k_params, in_dim=in_dim, latent_src=latent_src,
                          latent_tgt=latent_tgt, hidden=hidden,
                          n_protos_src=n_protos_src, n_protos_tgt=n_protos_tgt,
                          n_classes=n_classes)
    params = prepare_params(raw)

    xb_target_unlabel = jax.random.normal(k_u, (B, C, H, W), jnp.float32)
    xb_source = jax.random.normal(k_s, (B, C, H, W), jnp.float32)
    xb_target_label = jax.random.normal(k_l, (B, C, H, W), jnp.float32)

    fwd = jax.jit(functools.partial(transfer_model_forward, n_classes=n_classes))
    outs = jax.block_until_ready(
        fwd(params, xb_target_unlabel, xb_source, xb_target_label))

    # shape checks (the 7 outputs of TransferModel.forward)
    assert outs[0].shape == (B, in_dim)
    assert outs[1].shape == (B, in_dim)
    assert outs[2].shape == (B, n_classes)
    assert outs[3].shape == (n_protos_src, latent_tgt)
    assert outs[4].shape == (B, in_dim)
    assert outs[5].shape == (B, in_dim)
    assert outs[6].shape == (B, n_classes)

    # numerical check vs pure-f32 reference (kernel uses bf16 MXU operands)
    ref = _reference_forward(raw, xb_target_unlabel, xb_source, xb_target_label)
    for o, r in zip(outs, ref):
        assert o.shape == r.shape
        assert bool(jnp.all(jnp.isfinite(o)))
        tol = 2e-2 * max(1.0, float(jnp.max(jnp.abs(r))))
        err = float(jnp.max(jnp.abs(o - r)))
        assert err <= tol, (err, tol)

    print("KERNEL_OK")
</pallas_src>

<mosaic_0001>
module attributes {stable_mosaic.version = 11 : i64} {
  func.func @_fused_forward_kernel(%arg0: i32, %arg1: memref<8x256xf32, #tpu.memory_space<vmem>>, %arg2: memref<8x256xf32, #tpu.memory_space<vmem>>, %arg3: memref<8x256xf32, #tpu.memory_space<vmem>>, %arg4: memref<256x128xbf16, #tpu.memory_space<vmem>>, %arg5: memref<1x128xf32, #tpu.memory_space<vmem>>, %arg6: memref<128x256xbf16, #tpu.memory_space<vmem>>, %arg7: memref<1x256xf32, #tpu.memory_space<vmem>>, %arg8: memref<128x128xbf16, #tpu.memory_space<vmem>>, %arg9: memref<1x128xf32, #tpu.memory_space<vmem>>, %arg10: memref<1x128xf32, #tpu.memory_space<vmem>>, %arg11: memref<256x128xbf16, #tpu.memory_space<vmem>>, %arg12: memref<1x128xf32, #tpu.memory_space<vmem>>, %arg13: memref<128x256xbf16, #tpu.memory_space<vmem>>, %arg14: memref<1x256xf32, #tpu.memory_space<vmem>>, %arg15: memref<256x128xbf16, #tpu.memory_space<vmem>>, %arg16: memref<1x128xf32, #tpu.memory_space<vmem>>, %arg17: memref<8x256xf32, #tpu.memory_space<vmem>>, %arg18: memref<8x256xf32, #tpu.memory_space<vmem>>, %arg19: memref<8x128xf32, #tpu.memory_space<vmem>>, %arg20: memref<8x128xf32, #tpu.memory_space<vmem>>) attributes {dimension_semantics = [#tpu.dimension_semantics<parallel>], iteration_bounds = array<i64: 2>, scalar_prefetch = 0 : i64, scratch_operands = 0 : i64, tpu.core_type = #tpu.core_type<tc>, window_params = [{transform_indices = @transform_0, window_bounds = array<i64: 8, 256>}, {transform_indices = @transform_1, window_bounds = array<i64: 8, 256>}, {transform_indices = @transform_2, window_bounds = array<i64: 8, 256>}, {pipeline_mode = #tpu.pipeline_mode<synchronous>, transform_indices = @transform_3, window_bounds = array<i64: 256, 128>}, {pipeline_mode = #tpu.pipeline_mode<synchronous>, transform_indices = @transform_4, window_bounds = array<i64: 1, 128>}, {pipeline_mode = #tpu.pipeline_mode<synchronous>, transform_indices = @transform_5, window_bounds = array<i64: 128, 256>}, {pipeline_mode = #tpu.pipeline_mode<synchronous>, transform_indices = @transform_6, window_bounds = array<i64: 1, 256>}, {pipeline_mode = #tpu.pipeline_mode<synchronous>, transform_indices = @transform_7, window_bounds = array<i64: 128, 128>}, {pipeline_mode = #tpu.pipeline_mode<synchronous>, transform_indices = @transform_8, window_bounds = array<i64: 1, 128>}, {pipeline_mode = #tpu.pipeline_mode<synchronous>, transform_indices = @transform_9, window_bounds = array<i64: 1, 128>}, {pipeline_mode = #tpu.pipeline_mode<synchronous>, transform_indices = @transform_10, window_bounds = array<i64: 256, 128>}, {pipeline_mode = #tpu.pipeline_mode<synchronous>, transform_indices = @transform_11, window_bounds = array<i64: 1, 128>}, {pipeline_mode = #tpu.pipeline_mode<synchronous>, transform_indices = @transform_12, window_bounds = array<i64: 128, 256>}, {pipeline_mode = #tpu.pipeline_mode<synchronous>, transform_indices = @transform_13, window_bounds = array<i64: 1, 256>}, {pipeline_mode = #tpu.pipeline_mode<synchronous>, transform_indices = @transform_14, window_bounds = array<i64: 256, 128>}, {pipeline_mode = #tpu.pipeline_mode<synchronous>, transform_indices = @transform_15, window_bounds = array<i64: 1, 128>}, {transform_indices = @transform_16, window_bounds = array<i64: 8, 256>}, {transform_indices = @transform_17, window_bounds = array<i64: 8, 256>}, {transform_indices = @transform_18, window_bounds = array<i64: 8, 128>}, {transform_indices = @transform_19, window_bounds = array<i64: 8, 128>}]} {
    %c0 = arith.constant 0 : index
    %c0_0 = arith.constant 0 : index
    %0 = vector.load %arg4[%c0, %c0_0] : memref<256x128xbf16, #tpu.memory_space<vmem>>, vector<256x128xbf16>
    %c0_1 = arith.constant 0 : index
    %c0_2 = arith.constant 0 : index
    %1 = vector.load %arg5[%c0_1, %c0_2] : memref<1x128xf32, #tpu.memory_space<vmem>>, vector<1x128xf32>
    %c0_3 = arith.constant 0 : index
    %c0_4 = arith.constant 0 : index
    %2 = vector.load %arg6[%c0_3, %c0_4] : memref<128x256xbf16, #tpu.memory_space<vmem>>, vector<128x256xbf16>
    %c0_5 = arith.constant 0 : index
    %c0_6 = arith.constant 0 : index
    %3 = vector.load %arg7[%c0_5, %c0_6] : memref<1x256xf32, #tpu.memory_space<vmem>>, vector<1x256xf32>
    %c0_7 = arith.constant 0 : index
    %c0_8 = arith.constant 0 : index
    %4 = vector.load %arg1[%c0_7, %c0_8] : memref<8x256xf32, #tpu.memory_space<vmem>>, vector<8x256xf32>
    %5 = arith.truncf %4 : vector<8x256xf32> to vector<8x256xbf16>
    %cst = arith.constant dense<0.000000e+00> : vector<8x128xf32>
    %6 = tpu.matmul %5, %0, %cst {dimension_numbers = #tpu.dot_dimension_numbers<[1], [0], [0], [1], [0, 0, 1, 1], [], []>} : vector<8x256xbf16>, vector<256x128xbf16>, vector<8x128xf32> -> vector<8x128xf32>
    %7 = vector.broadcast %1 : vector<1x128xf32> to vector<8x128xf32>
    %8 = arith.addf %6, %7 : vector<8x128xf32>
    %9 = arith.truncf %8 : vector<8x128xf32> to vector<8x128xbf16>
    %cst_9 = arith.constant dense<0.000000e+00> : vector<8x256xf32>
    %10 = tpu.matmul %9, %2, %cst_9 {dimension_numbers = #tpu.dot_dimension_numbers<[1], [0], [0], [1], [0, 0, 1, 1], [], []>} : vector<8x128xbf16>, vector<128x256xbf16>, vector<8x256xf32> -> vector<8x256xf32>
    %11 = vector.broadcast %3 : vector<1x256xf32> to vector<8x256xf32>
    %12 = arith.addf %10, %11 : vector<8x256xf32>
    %c0_10 = arith.constant 0 : index
    %c0_11 = arith.constant 0 : index
    %13 = vector.load %arg17[%c0_10, %c0_11] : memref<8x256xf32, #tpu.memory_space<vmem>>, vector<8x256xf32>
    tpu.vector_store %arg17[%c0_10, %c0_11], %12 {strides = array<i32>} : memref<8x256xf32, #tpu.memory_space<vmem>>, vector<8x256xf32>,
    %c0_12 = arith.constant 0 : index
    %c0_13 = arith.constant 0 : index
    %14 = vector.load %arg2[%c0_12, %c0_13] : memref<8x256xf32, #tpu.memory_space<vmem>>, vector<8x256xf32>
    %15 = arith.truncf %14 : vector<8x256xf32> to vector<8x256xbf16>
    %cst_14 = arith.constant dense<0.000000e+00> : vector<8x128xf32>
    %16 = tpu.matmul %15, %0, %cst_14 {dimension_numbers = #tpu.dot_dimension_numbers<[1], [0], [0], [1], [0, 0, 1, 1], [], []>} : vector<8x256xbf16>, vector<256x128xbf16>, vector<8x128xf32> -> vector<8x128xf32>
    %17 = vector.broadcast %1 : vector<1x128xf32> to vector<8x128xf32>
    %18 = arith.addf %16, %17 : vector<8x128xf32>
    %19 = arith.truncf %18 : vector<8x128xf32> to vector<8x128xbf16>
    %cst_15 = arith.constant dense<0.000000e+00> : vector<8x256xf32>
    %20 = tpu.matmul %19, %2, %cst_15 {dimension_numbers = #tpu.dot_dimension_numbers<[1], [0], [0], [1], [0, 0, 1, 1], [], []>} : vector<8x128xbf16>, vector<128x256xbf16>, vector<8x256xf32> -> vector<8x256xf32>
    %21 = vector.broadcast %3 : vector<1x256xf32> to vector<8x256xf32>
    %22 = arith.addf %20, %21 : vector<8x256xf32>
    %c0_16 = arith.constant 0 : index
    %c0_17 = arith.constant 0 : index
    %23 = vector.load %arg18[%c0_16, %c0_17] : memref<8x256xf32, #tpu.memory_space<vmem>>, vector<8x256xf32>
    tpu.vector_store %arg18[%c0_16, %c0_17], %22 {strides = array<i32>} : memref<8x256xf32, #tpu.memory_space<vmem>>, vector<8x256xf32>,
    %24 = arith.mulf %18, %18 : vector<8x128xf32>
    %cst_18 = arith.constant dense<0.000000e+00> : vector<8xf32>
    %25 = vector.multi_reduction <add>, %24, %cst_18 [1] : vector<8x128xf32> to vector<8xf32>
    %26 = vector.shape_cast %25 : vector<8xf32> to vector<8x1xf32>
    %27 = arith.truncf %18 : vector<8x128xf32> to vector<8x128xbf16>
    %c0_19 = arith.constant 0 : index
    %c0_20 = arith.constant 0 : index
    %28 = vector.load %arg8[%c0_19, %c0_20] : memref<128x128xbf16, #tpu.memory_space<vmem>>, vector<128x128xbf16>
    %cst_21 = arith.constant dense<0.000000e+00> : vector<8x128xf32>
    %29 = tpu.matmul %27, %28, %cst_21 {dimension_numbers = #tpu.dot_dimension_numbers<[1], [0], [0], [1], [0, 0, 1, 1], [], []>} : vector<8x128xbf16>, vector<128x128xbf16>, vector<8x128xf32> -> vector<8x128xf32>
    %cst_22 = arith.constant -2.000000e+00 : f32
    %30 = vector.broadcast %cst_22 : f32 to vector<8x128xf32>
    %31 = arith.mulf %30, %29 : vector<8x128xf32>
    %c0_23 = arith.constant 0 : index
    %c0_24 = arith.constant 0 : index
    %32 = vector.load %arg9[%c0_23, %c0_24] : memref<1x128xf32, #tpu.memory_space<vmem>>, vector<1x128xf32>
    %33 = vector.broadcast %26 : vector<8x1xf32> to vector<8x128xf32>
    %34 = vector.broadcast %32 : vector<1x128xf32> to vector<8x128xf32>
    %35 = arith.mulf %33, %34 : vector<8x128xf32>
    %36 = arith.addf %31, %35 : vector<8x128xf32>
    %c0_25 = arith.constant 0 : index
    %c0_26 = arith.constant 0 : index
    %37 = vector.load %arg10[%c0_25, %c0_26] : memref<1x128xf32, #tpu.memory_space<vmem>>, vector<1x128xf32>
    %38 = vector.broadcast %37 : vector<1x128xf32> to vector<8x128xf32>
    %39 = arith.addf %36, %38 : vector<8x128xf32>
    %c0_27 = arith.constant 0 : index
    %c0_28 = arith.constant 0 : index
    %40 = vector.load %arg19[%c0_27, %c0_28] : memref<8x128xf32, #tpu.memory_space<vmem>>, vector<8x128xf32>
    tpu.vector_store %arg19[%c0_27, %c0_28], %39 {strides = array<i32>} : memref<8x128xf32, #tpu.memory_space<vmem>>, vector<8x128xf32>,
    %c0_29 = arith.constant 0 : index
    %c0_30 = arith.constant 0 : index
    %41 = vector.load %arg3[%c0_29, %c0_30] : memref<8x256xf32, #tpu.memory_space<vmem>>, vector<8x256xf32>
    %42 = arith.truncf %41 : vector<8x256xf32> to vector<8x256xbf16>
    %c0_31 = arith.constant 0 : index
    %c0_32 = arith.constant 0 : index
    %43 = vector.load %arg11[%c0_31, %c0_32] : memref<256x128xbf16, #tpu.memory_space<vmem>>, vector<256x128xbf16>
    %cst_33 = arith.constant dense<0.000000e+00> : vector<8x128xf32>
    %44 = tpu.matmul %42, %43, %cst_33 {dimension_numbers = #tpu.dot_dimension_numbers<[1], [0], [0], [1], [0, 0, 1, 1], [], []>} : vector<8x256xbf16>, vector<256x128xbf16>, vector<8x128xf32> -> vector<8x128xf32>
    %c0_34 = arith.constant 0 : index
    %c0_35 = arith.constant 0 : index
    %45 = vector.load %arg12[%c0_34, %c0_35] : memref<1x128xf32, #tpu.memory_space<vmem>>, vector<1x128xf32>
    %46 = vector.broadcast %45 : vector<1x128xf32> to vector<8x128xf32>
    %47 = arith.addf %44, %46 : vector<8x128xf32>
    %48 = arith.truncf %47 : vector<8x128xf32> to vector<8x128xbf16>
    %c0_36 = arith.constant 0 : index
    %c0_37 = arith.constant 0 : index
    %49 = vector.load %arg13[%c0_36, %c0_37] : memref<128x256xbf16, #tpu.memory_space<vmem>>, vector<128x256xbf16>
    %cst_38 = arith.constant dense<0.000000e+00> : vector<8x256xf32>
    %50 = tpu.matmul %48, %49, %cst_38 {dimension_numbers = #tpu.dot_dimension_numbers<[1], [0], [0], [1], [0, 0, 1, 1], [], []>} : vector<8x128xbf16>, vector<128x256xbf16>, vector<8x256xf32> -> vector<8x256xf32>
    %c0_39 = arith.constant 0 : index
    %c0_40 = arith.constant 0 : index
    %51 = vector.load %arg14[%c0_39, %c0_40] : memref<1x256xf32, #tpu.memory_space<vmem>>, vector<1x256xf32>
    %52 = vector.broadcast %51 : vector<1x256xf32> to vector<8x256xf32>
    %53 = arith.addf %50, %52 : vector<8x256xf32>
    %cst_41 = arith.constant 0.000000e+00 : f32
    %54 = vector.broadcast %cst_41 : f32 to vector<8x256xf32>
    %55 = arith.maximumf %53, %54 : vector<8x256xf32>
    %56 = arith.truncf %55 : vector<8x256xf32> to vector<8x256xbf16>
    %c0_42 = arith.constant 0 : index
    %c0_43 = arith.constant 0 : index
    %57 = vector.load %arg15[%c0_42, %c0_43] : memref<256x128xbf16, #tpu.memory_space<vmem>>, vector<256x128xbf16>
    %cst_44 = arith.constant dense<0.000000e+00> : vector<8x128xf32>
    %58 = tpu.matmul %56, %57, %cst_44 {dimension_numbers = #tpu.dot_dimension_numbers<[1], [0], [0], [1], [0, 0, 1, 1], [], []>} : vector<8x256xbf16>, vector<256x128xbf16>, vector<8x128xf32> -> vector<8x128xf32>
    %c0_45 = arith.constant 0 : index
    %c0_46 = arith.constant 0 : index
    %59 = vector.load %arg16[%c0_45, %c0_46] : memref<1x128xf32, #tpu.memory_space<vmem>>, vector<1x128xf32>
    %60 = vector.broadcast %59 : vector<1x128xf32> to vector<8x128xf32>
    %61 = arith.addf %58, %60 : vector<8x128xf32>
    %62 = arith.mulf %61, %61 : vector<8x128xf32>
    %cst_47 = arith.constant dense<0.000000e+00> : vector<8xf32>
    %63 = vector.multi_reduction <add>, %62, %cst_47 [1] : vector<8x128xf32> to vector<8xf32>
    %64 = vector.shape_cast %63 : vector<8xf32> to vector<8x1xf32>
    %65 = arith.truncf %61 : vector<8x128xf32> to vector<8x128xbf16>
    %c0_48 = arith.constant 0 : index
    %c0_49 = arith.constant 0 : index
    %66 = vector.load %arg8[%c0_48, %c0_49] : memref<128x128xbf16, #tpu.memory_space<vmem>>, vector<128x128xbf16>
    %cst_50 = arith.constant dense<0.000000e+00> : vector<8x128xf32>
    %67 = tpu.matmul %65, %66, %cst_50 {dimension_numbers = #tpu.dot_dimension_numbers<[1], [0], [0], [1], [0, 0, 1, 1], [], []>} : vector<8x128xbf16>, vector<128x128xbf16>, vector<8x128xf32> -> vector<8x128xf32>
    %cst_51 = arith.constant -2.000000e+00 : f32
    %68 = vector.broadcast %cst_51 : f32 to vector<8x128xf32>
    %69 = arith.mulf %68, %67 : vector<8x128xf32>
    %c0_52 = arith.constant 0 : index
    %c0_53 = arith.constant 0 : index
    %70 = vector.load %arg9[%c0_52, %c0_53] : memref<1x128xf32, #tpu.memory_space<vmem>>, vector<1x128xf32>
    %71 = vector.broadcast %64 : vector<8x1xf32> to vector<8x128xf32>
    %72 = vector.broadcast %70 : vector<1x128xf32> to vector<8x128xf32>
    %73 = arith.mulf %71, %72 : vector<8x128xf32>
    %74 = arith.addf %69, %73 : vector<8x128xf32>
    %c0_54 = arith.constant 0 : index
    %c0_55 = arith.constant 0 : index
    %75 = vector.load %arg10[%c0_54, %c0_55] : memref<1x128xf32, #tpu.memory_space<vmem>>, vector<1x128xf32>
    %76 = vector.broadcast %75 : vector<1x128xf32> to vector<8x128xf32>
    %77 = arith.addf %74, %76 : vector<8x128xf32>
    %c0_56 = arith.constant 0 : index
    %c0_57 = arith.constant 0 : index
    %78 = vector.load %arg20[%c0_56, %c0_57] : memref<8x128xf32, #tpu.memory_space<vmem>>, vector<8x128xf32>
    tpu.vector_store %arg20[%c0_56, %c0_57], %77 {strides = array<i32>} : memref<8x128xf32, #tpu.memory_space<vmem>>, vector<8x128xf32>,
    return
  }
  func.func @transform_0(%arg0: i32) -> (i32, i32) {
    %c0_i32 = arith.constant 0 : i32
    %c0_i32_0 = arith.constant 0 : i32
    return %arg0, %c0_i32 : i32, i32
  }
  func.func @transform_1(%arg0: i32) -> (i32, i32) {
    %c0_i32 = arith.constant 0 : i32
    %c0_i32_0 = arith.constant 0 : i32
    return %arg0, %c0_i32 : i32, i32
  }
  func.func @transform_2(%arg0: i32) -> (i32, i32) {
    %c0_i32 = arith.constant 0 : i32
    %c0_i32_0 = arith.constant 0 : i32
    return %arg0, %c0_i32 : i32, i32
  }
  func.func @transform_3(%arg0: i32) -> (i32, i32) {
    %c0_i32 = arith.constant 0 : i32
    %c0_i32_0 = arith.constant 0 : i32
    %c0_i32_1 = arith.constant 0 : i32
    return %c0_i32, %c0_i32_0 : i32, i32
  }
  func.func @transform_4(%arg0: i32) -> (i32, i32) {
    %c0_i32 = arith.constant 0 : i32
    %c0_i32_0 = arith.constant 0 : i32
    %c0_i32_1 = arith.constant 0 : i32
    return %c0_i32, %c0_i32_0 : i32, i32
  }
  func.func @transform_5(%arg0: i32) -> (i32, i32) {
    %c0_i32 = arith.constant 0 : i32
    %c0_i32_0 = arith.constant 0 : i32
    %c0_i32_1 = arith.constant 0 : i32
    return %c0_i32, %c0_i32_0 : i32, i32
  }
  func.func @transform_6(%arg0: i32) -> (i32, i32) {
    %c0_i32 = arith.constant 0 : i32
    %c0_i32_0 = arith.constant 0 : i32
    %c0_i32_1 = arith.constant 0 : i32
    return %c0_i32, %c0_i32_0 : i32, i32
  }
  func.func @transform_7(%arg0: i32) -> (i32, i32) {
    %c0_i32 = arith.constant 0 : i32
    %c0_i32_0 = arith.constant 0 : i32
    %c0_i32_1 = arith.constant 0 : i32
    return %c0_i32, %c0_i32_0 : i32, i32
  }
  func.func @transform_8(%arg0: i32) -> (i32, i32) {
    %c0_i32 = arith.constant 0 : i32
    %c0_i32_0 = arith.constant 0 : i32
    %c0_i32_1 = arith.constant 0 : i32
    return %c0_i32, %c0_i32_0 : i32, i32
  }
  func.func @transform_9(%arg0: i32) -> (i32, i32) {
    %c0_i32 = arith.constant 0 : i32
    %c0_i32_0 = arith.constant 0 : i32
    %c0_i32_1 = arith.constant 0 : i32
    return %c0_i32, %c0_i32_0 : i32, i32
  }
  func.func @transform_10(%arg0: i32) -> (i32, i32) {
    %c0_i32 = arith.constant 0 : i32
    %c0_i32_0 = arith.constant 0 : i32
    %c0_i32_1 = arith.constant 0 : i32
    return %c0_i32, %c0_i32_0 : i32, i32
  }
  func.func @transform_11(%arg0: i32) -> (i32, i32) {
    %c0_i32 = arith.constant 0 : i32
    %c0_i32_0 = arith.constant 0 : i32
    %c0_i32_1 = arith.constant 0 : i32
    return %c0_i32, %c0_i32_0 : i32, i32
  }
  func.func @transform_12(%arg0: i32) -> (i32, i32) {
    %c0_i32 = arith.constant 0 : i32
    %c0_i32_0 = arith.constant 0 : i32
    %c0_i32_1 = arith.constant 0 : i32
    return %c0_i32, %c0_i32_0 : i32, i32
  }
  func.func @transform_13(%arg0: i32) -> (i32, i32) {
    %c0_i32 = arith.constant 0 : i32
    %c0_i32_0 = arith.constant 0 : i32
    %c0_i32_1 = arith.constant 0 : i32
    return %c0_i32, %c0_i32_0 : i32, i32
  }
  func.func @transform_14(%arg0: i32) -> (i32, i32) {
    %c0_i32 = arith.constant 0 : i32
    %c0_i32_0 = arith.constant 0 : i32
    %c0_i32_1 = arith.constant 0 : i32
    return %c0_i32, %c0_i32_0 : i32, i32
  }
  func.func @transform_15(%arg0: i32) -> (i32, i32) {
    %c0_i32 = arith.constant 0 : i32
    %c0_i32_0 = arith.constant 0 : i32
    %c0_i32_1 = arith.constant 0 : i32
    return %c0_i32, %c0_i32_0 : i32, i32
  }
  func.func @transform_16(%arg0: i32) -> (i32, i32) {
    %c0_i32 = arith.constant 0 : i32
    %c0_i32_0 = arith.constant 0 : i32
    return %arg0, %c0_i32 : i32, i32
  }
  func.func @transform_17(%arg0: i32) -> (i32, i32) {
    %c0_i32 = arith.constant 0 : i32
    %c0_i32_0 = arith.constant 0 : i32
    return %arg0, %c0_i32 : i32, i32
  }
  func.func @transform_18(%arg0: i32) -> (i32, i32) {
    %c0_i32 = arith.constant 0 : i32
    %c0_i32_0 = arith.constant 0 : i32
    return %arg0, %c0_i32 : i32, i32
  }
  func.func @transform_19(%arg0: i32) -> (i32, i32) {
    %c0_i32 = arith.constant 0 : i32
    %c0_i32_0 = arith.constant 0 : i32
    return %arg0, %c0_i32 : i32, i32
  }
}

</mosaic_0001>

<bundles_post_ra>
// kernel: transfer_model_forward.1
= control target key start
LH: loop header
LB: loop body
LE: loop exit
PB: predicated region body
PF: predicated region fallthrough
CT: control target
= control target key end

     0   :  { %s3483_s0 = inlined_call_operand.vmem [shape: f32[16,256], index: 0, kind: input, shape index: {}]   ;;  %s3484_s1 = inlined_call_operand.vmem [shape: f32[16,256], index: 1, kind: input, shape index: {}]   ;;  %s3485_s2 = inlined_call_operand.vmem [shape: f32[16,256], index: 2, kind: input, shape index: {}]   ;;  %s3486_s3 = inlined_call_operand.vmem [shape: bf16[256,128], index: 3, kind: input, shape index: {}]   ;;  %s3487_s4 = inlined_call_operand.vmem [shape: f32[1,128], index: 4, kind: input, shape index: {}]   ;;  %s3488_s5 = inlined_call_operand.vmem [shape: bf16[128,256], index: 5, kind: input, shape index: {}]   ;;  %s3489_s6 = inlined_call_operand.vmem [shape: f32[1,256], index: 6, kind: input, shape index: {}]   ;;  %s3490_s7 = inlined_call_operand.vmem [shape: bf16[128,128], index: 7, kind: input, shape index: {}]   ;;  %s3491_s8 = inlined_call_operand.vmem [shape: f32[1,128], index: 8, kind: input, shape index: {}]   ;;  %s3492_s9 = inlined_call_operand.vmem [shape: f32[1,128], index: 9, kind: input, shape index: {}]   ;;  %s3493_s10 = inlined_call_operand.hbm [shape: bf16[256,128], index: 10, kind: input, shape index: {}]   ;;  %s3494_s11 = inlined_call_operand.vmem [shape: f32[1,128], index: 11, kind: input, shape index: {}]   ;;  %s3495_s12 = inlined_call_operand.hbm [shape: bf16[128,256], index: 12, kind: input, shape index: {}]   ;;  %s3496_s13 = inlined_call_operand.vmem [shape: f32[1,256], index: 13, kind: input, shape index: {}]   ;;  %s3497_s14 = inlined_call_operand.hbm [shape: bf16[256,128], index: 14, kind: input, shape index: {}]   ;;  %s3498_s15 = inlined_call_operand.vmem [shape: f32[1,128], index: 15, kind: input, shape index: {}]   ;;  %s3499_s16 = inlined_call_operand.hbm [shape: f32[16,256], index: 16, kind: output, shape index: {0}]   ;;  %s3500_s17 = inlined_call_operand.hbm [shape: f32[16,256], index: 17, kind: output, shape index: {1}]   ;;  %s3501_s18 = inlined_call_operand.hbm [shape: f32[16,128], index: 18, kind: output, shape index: {2}]   ;;  %s3502_s19 = inlined_call_operand.hbm [shape: f32[16,128], index: 19, kind: output, shape index: {3}]  }
   0x1   :  { %3515 = sst [smem:[#allocation25_spill]] %s3483_s0 }
   0x2   :  { %3516 = sst [smem:[#allocation26_spill]] %s3484_s1 }
   0x3   :  { %3517 = sst [smem:[#allocation27_spill]] %s3485_s2 }
   0x4   :  { %3518 = sst [smem:[#allocation28_spill]] %s3486_s3 }
   0x5   :  { %3519 = sst [smem:[#allocation29_spill]] %s3487_s4 }
   0x6   :  { %3520 = sst [smem:[#allocation30_spill]] %s3488_s5 }
   0x7   :  { %3521 = sst [smem:[#allocation31_spill]] %s3489_s6 }
   0x8   :  { %3522 = sst [smem:[#allocation32_spill]] %s3493_s10 }
   0x9   :  { %3523 = sst [smem:[#allocation33_spill]] %s3495_s12 }
   0xa   :  { %3524 = sst [smem:[#allocation34_spill]] %s3501_s18 }
   0xb   :  { %3525 = sst [smem:[#allocation35_spill]] %s3502_s19 }
   0xc   :  { %25 = vsyncpa [#allocation3], 0 }
   0xd   :  { %26 = vsyncpa [#allocation6], 0 }
   0xe   :  { %27 = vsyncpa [#allocation4], 0 }
   0xf   :  { %29 = vsyncpa [#allocation4 + $0x1], 0 }
  0x10   :  { %30 = vsyncpa [#allocation10], 0 }
  0x11   :  { %32 = vsyncpa [#allocation10 + $0x1], 0 }
  0x12   :  { %33 = vsyncpa [#allocation13], 0 }
  0x13   :  { %35 = vsyncpa [#allocation13 + $0x1], 0  ;;  %s2970_s0 = smov 0   ;;  %s2972_s30 = smov 0  }
  0x14   :  { %s2974_s20 = smov 0   ;;  %s2976_s21 = smov 0  }
  0x15 LB: > { %3526 = sst [smem:[#allocation19_spill]] %s2849_s0  ;;  %s2991_s1 = sadd.s32 4294967295, %s2861_s21   ;;  %s2861_s21 = sphi %s2976_s21, %s3552_s21   ;;  %s2857_s20 = sphi %s2974_s20, %s3554_s20   ;;  %s2853_s30 = sphi %s2972_s30, %s3556_s30   ;;  %s2849_s0 = sphi %s2970_s0, %s3555_s0  }
  0x16   : > { %3527 = sst [smem:[#allocation20_spill]] %s2857_s20  ;;  %s3504_s22 = sadd.s32 4294967294, %s2861_s21  }
  0x17   : > { %3528 = sst [smem:[#allocation21_spill]] %s2861_s21  ;;  %s2995_s2 = sadd.s32 1, %s2861_s21  }
  0x18   : > { %3529 = sst [smem:[#allocation22_spill]] %s2995_s2  ;;  %s399_s23 = sadd.s32 1, %s2857_s20 }
  0x19   : > { %s396_s24 = ssub.s32 %s2861_s21, %s2995_s2  ;;  %p409_p0 = scmp.ne.s32.totalorder %s2857_s20, %s2853_s30 }
  0x1a   : > { %p397_p1 = scmp.eq.s32.totalorder %s396_s24, 0  ;;  %p410_p2 = scmp.eq.s32.totalorder %s2991_s1, 1 }
  0x1b   : > { %p415_p3 = scmp.ne.s32.totalorder %s2853_s30, %s2849_s0  ;;  %p416_p4 = scmp.eq.s32.totalorder %s3504_s22, 1 }
  0x1c   : > { %s3008_s25 = scalar_select %p397_p1, %s2857_s20, %s399_s23  }
  0x1d   : > { %p3010_p5 = por %p410_p2, %p409_p0  ;;  %p3014_p6 = por %p416_p4, %p415_p3 }
  0x1e   : > { %3530 = sst [smem:[#allocation23_spill]] %s3008_s25  ;;  %p1997_p7 = scmp.ge.s32.totalorder %s2861_s21, 1 }
  0x1f   : > { %s3532_s26 = scalar_select %p3014_p6, 1, 0 }
  0x20   : > { %p501_p8 = scmp.lt.s32.totalorder %s2861_s21, 3  ;;  %p2556_p9 = scmp.eq.s32.totalorder %s2991_s1, 0 }
  0x21   : > { %3533 = sst [smem:[#allocation24_spill]] %s3532_s26  ;;  %s2863_s24 = smov [#allocation5]  }
  0x22   : > { %p3021_p10 = pnand %p1997_p7, %p501_p8  ;;  %s3535_s12 = sld [smem:[#allocation33_spill]] }
  0x23   : > { %s552_s22 = sshll.u32 %s2863_s24, 4  ;;  %s3537_s10 = sld [smem:[#allocation32_spill]]  ;;  %s553_s22 = int_to_ptr.vmem [resolvable:$true] %s552_s22 }
  0x24   : > { %p2533_p11 = pneg %p3021_p10  ;;  %s2864_s28 = smov 128  }
  0x25   : > { %s2865_s29 = smov 8   ;;  %s2867_s0 = smov 64  }
  0x26   : > { %p3032_p12 = pnand %p2556_p9, %p2533_p11  ;;  %s2868_s21 = smov 4  }
  0x27   : > { %s567_s20 = sshll.u32 %s3497_s14, 4  ;;  %s2869_s2 = smov [#allocation7]   ;;  %s568_s20 = int_to_ptr.hbm [resolvable:$true] %s567_s20 }
  0x28   : > { %s550_s23 = sshll.u32 %s3535_s12, 4  ;;  %s2866_s12 = smov [#allocation2]   ;;  %s551_s23 = int_to_ptr.hbm [resolvable:$true] %s550_s23 }
  0x29   : > { %s533_s26 = sshll.u32 %s3537_s10, 4  ;;  %s535_s24 = sshll.u32 %s2866_s12, 4  ;;  %s534_s26 = int_to_ptr.hbm [resolvable:$true] %s533_s26  ;;  %s536_s24 = int_to_ptr.vmem [resolvable:$true] %s535_s24 }
  0x2a   : > { %2539 = dma.hbm_to_vmem [thread:$0]  (!%p3032_p12), %s551_s23, 2048, %s553_s22, [#allocation6], %s2864_s28, %s2864_s28, %s2865_s29  }
  0x2b   : > { %2536 = dma.hbm_to_vmem [thread:$0]  (!%p3032_p12), %s534_s26, 2048, %s536_s24, [#allocation3], %s2867_s0, %s2867_s0, %s2868_s21  }
  0x2c   : > { %s569_s10 = sshll.u32 %s2869_s2, 4  ;;  %612 = sbr.rel (%p3021_p10) target bundleno = 818 (0x332), region = 84  ;;  %s570_s10 = int_to_ptr.vmem [resolvable:$true] %s569_s10 }
  0x2d   : > { %2542 = dma.hbm_to_vmem [thread:$0]  (!%p3032_p12), %s568_s20, 2048, %s570_s10, [#allocation6], %s2867_s0, %s2867_s0, %s2868_s21  }
  0x31   : > { %2828 = dma.done.wait (%p2556_p9), [#allocation3], 2048  }
  0x32   : > { %2830 = vsyncadd (%p2556_p9), [#allocation3], 4294965248 }
  0x33   : > { %2832 = dma.done.wait (%p2556_p9), [#allocation6], 4096  }
  0x34   : > { %2834 = vsyncadd (%p2556_p9), [#allocation6], 4294963200  ;;  %s3538_s19 = sld [smem:[#allocation28_spill]]  ;;  %p704_p13 = scmp.lt.s32.totalorder %s2991_s1, 1 }
  0x35   : > { %s3539_s10 = sld [smem:[#allocation25_spill]]  ;;  %s1716_s12 = sand.u32 1, %s2991_s1  }
  0x36   : > { %s705_s22 = scalar_select %p704_p13, %s2991_s1, 1 }
  0x37   : > { %s3540_s5 = sld [smem:[#allocation30_spill]] }
  0x38   : > { %s3112_s28 = sshll.u32 %s705_s22, 4  ;;  %s3541_s25 = sld [smem:[#allocation26_spill]] }
  0x39   : > { %s3542_s4 = sld [smem:[#allocation29_spill]] }
  0x3a   : > { %v2422_v0 = vld [vmem:[%s3538_s19 + $0x38] sm:$0xff]  ;;  %v2421_v2 = vld [vmem:[%s3538_s19 + $0x30] sm:$0xff]  ;;  %v2420_v4 = vld [vmem:[%s3538_s19 + $0x28] sm:$0xff]  ;;  %s3543_s20 = sld [smem:[#allocation27_spill]] }
  0x3b   : > { %v2430_v1 = vld [vmem:[%s3538_s19 + $0x78] sm:$0xff]  ;;  %872 = vmatpush.bf16.msra.mxu0 %v2422_v0  ;;  %v2429_v3 = vld [vmem:[%s3538_s19 + $0x70] sm:$0xff]  ;;  %v2428_v5 = vld [vmem:[%s3538_s19 + $0x68] sm:$0xff]  ;;  %s708_s0 = scalar_lea.vmem %s3539_s10, %s3112_s28  ;;  %s3544_s6 = sld [smem:[#allocation31_spill]] }
  0x3c   : > { %885 = vmatpush.bf16.msra.mxu1 %v2430_v1  ;;  %v3079_v6 = vld [vmem:[%s3538_s19 + $0x20] sm:$0xff]  ;;  %v3092_v8 = vld [vmem:[%s3538_s19 + $0x18] sm:$0xff]  ;;  %v3105_v10 = vld [vmem:[%s3538_s19 + $0x10] sm:$0xff] }
  0x3d   : > { %v3084_v7 = vld [vmem:[%s3538_s19 + $0x60] sm:$0xff]  ;;  %v3097_v9 = vld [vmem:[%s3538_s19 + $0x58] sm:$0xff]  ;;  %v3110_v11 = vld [vmem:[%s3538_s19 + $0x50] sm:$0xff] }
  0x3e   : > { %v3119_v12 = vld [vmem:[%s3538_s19 + $0x8] sm:$0xff]  ;;  %v3133_v14 = vld [vmem:[%s3538_s19] sm:$0xff]  ;;  %v2138_v20 = vld [vmem:[%s3540_s5 + $0x70] sm:$0xf]  ;;  %s713_s26 = scalar_lea.vmem %s3541_s25, %s3112_s28 }
  0x3f   : > { %873 = vmatpush.bf16.msra.mxu0 %v2421_v2  ;;  %v3124_v13 = vld [vmem:[%s3538_s19 + $0x48] sm:$0xff]  ;;  %v3140_v15 = vld [vmem:[%s3538_s19 + $0x40] sm:$0xff]  ;;  %v2446_v21 = vld [vmem:[%s3540_s5 + $0x74] sm:$0xf0] }
  0x40   : > { %886 = vmatpush.bf16.msra.mxu1 %v2429_v3  ;;  %v769_v16 = vld [vmem:[%s708_s0] sm:$0xff]  ;;  %v770_v17 = vld [vmem:[%s708_s0 + $0x8] sm:$0xff]  ;;  %v3150_v22 = vor.u32 %v2446_v21, %v2138_v20  ;;  %v2445_v25 = vld [vmem:[%s3540_s5 + $0x74] sm:$0xf]  ;;  %s3305_s2 = scalar_lea.vmem %s3543_s20, %s3112_s28  ;;  %s3310_s28 = sand.u32 1, %s2853_s30  }
  0x41   : > { %v771_v18 = vpack.c.bf16 %v769_v16, %v769_v16  ;;  %v772_v19 = vpack.c.bf16 %v770_v17, %v770_v17  ;;  %v2130_v23 = vld [vmem:[%s3540_s5 + $0x60] sm:$0xf]  ;;  %v2444_v24 = vld [vmem:[%s3540_s5 + $0x64] sm:$0xf0]  ;;  %v2140_v26 = vld [vmem:[%s3540_s5 + $0x78] sm:$0xf0] }
  0x42   : > { %984 = vmatpush.bf16.msra.mxu2 %v3150_v22  ;;  %v3165_v27 = vor.u32 %v2444_v24, %v2130_v23  ;;  %v3167_v28 = vor.u32 %v2445_v25, %v2140_v26  ;;  %v2443_v29 = vld [vmem:[%s3540_s5 + $0x64] sm:$0xf]  ;;  %v2132_v30 = vld [vmem:[%s3540_s5 + $0x68] sm:$0xf0]  ;;  %v2122_v31 = vld [vmem:[%s3540_s5 + $0x50] sm:$0xf] }
  0x43   : > { %874 = vmatpush.bf16.msra.mxu0 %v2420_v4  ;;  %v2442_v32 = vld [vmem:[%s3540_s5 + $0x54] sm:$0xf0]  ;;  %v3182_v33 = vor.u32 %v2443_v29, %v2132_v30  ;;  %v2441_v34 = vld [vmem:[%s3540_s5 + $0x54] sm:$0xf]  ;;  %v2124_v35 = vld [vmem:[%s3540_s5 + $0x58] sm:$0xf0] }
  0x44   : > { %887 = vmatpush.bf16.msra.mxu1 %v2428_v5  ;;  %997 = vmatpush.bf16.msra.mxu3 %v3167_v28  ;;  %v3191_v36 = vor.u32 %v2442_v32, %v2122_v31  ;;  %v2114_v37 = vld [vmem:[%s3540_s5 + $0x40] sm:$0xf]  ;;  %v2440_v38 = vld [vmem:[%s3540_s5 + $0x44] sm:$0xf0]  ;;  %v2127_v39 = vor.u32 %v2441_v34, %v2124_v35  ;;  %v2439_v40 = vld [vmem:[%s3540_s5 + $0x44] sm:$0xf] }
  0x45   : > { %v2116_v41 = vld [vmem:[%s3540_s5 + $0x48] sm:$0xf0]  ;;  %v2115_v42 = vor.u32 %v2440_v38, %v2114_v37  ;;  %v2106_v43 = vld [vmem:[%s3540_s5 + $0x30] sm:$0xf]  ;;  %v2438_v44 = vld [vmem:[%s3540_s5 + $0x34] sm:$0xf0] }
  0x46   : > { %985 = vmatpush.bf16.msra.mxu2 %v3165_v27  ;;  %v2119_v45 = vor.u32 %v2439_v40, %v2116_v41  ;;  %v2437_v46 = vld [vmem:[%s3540_s5 + $0x34] sm:$0xf]  ;;  %v2108_v47 = vld [vmem:[%s3540_s5 + $0x38] sm:$0xf0]  ;;  %v2107_v48 = vor.u32 %v2438_v44, %v2106_v43  ;;  %v2098_v49 = vld [vmem:[%s3540_s5 + $0x20] sm:$0xf] }
  0x47   : > { %875 = vmatpush.bf16.msra.mxu0 %v3079_v6  ;;  %v2436_v50 = vld [vmem:[%s3540_s5 + $0x24] sm:$0xf0]  ;;  %v2111_v51 = vor.u32 %v2437_v46, %v2108_v47  ;;  %v2435_v52 = vld [vmem:[%s3540_s5 + $0x24] sm:$0xf]  ;;  %v2100_v53 = vld [vmem:[%s3540_s5 + $0x28] sm:$0xf0] }
  0x48   : > { %888 = vmatpush.bf16.msra.mxu1 %v3084_v7  ;;  %998 = vmatpush.bf16.msra.mxu3 %v3182_v33  ;;  %v2099_v54 = vor.u32 %v2436_v50, %v2098_v49  ;;  %v2090_v55 = vld [vmem:[%s3540_s5 + $0x10] sm:$0xf]  ;;  %v2434_v56 = vld [vmem:[%s3540_s5 + $0x14] sm:$0xf0]  ;;  %v2103_v57 = vor.u32 %v2435_v52, %v2100_v53  ;;  %v2433_v58 = vld [vmem:[%s3540_s5 + $0x14] sm:$0xf] }
  0x49   : > { %v2092_v59 = vld [vmem:[%s3540_s5 + $0x18] sm:$0xf0]  ;;  %v2091_v60 = vor.u32 %v2434_v56, %v2090_v55  ;;  %v1012_v61 = vld [vmem:[%s713_s26] sm:$0xff]  ;;  %v1013_v62 = vld [vmem:[%s713_s26 + $0x8] sm:$0xff]  ;;  %s2006_s10 = sshll.u32 %s3310_s28, 4  ;;  %s3514_s27 = sshll.u32 %s3310_s28, 3 }
  0x4a   : > { %986 = vmatpush.bf16.msra.mxu2 %v3191_v36  ;;  %v2082_v63 = vld [vmem:[%s3540_s5] sm:$0xf]  ;;  %v2449_v16 = vld [vmem:[%s3490_s7 + $0x10] sm:$0xff]  ;;  %v2448_v17 = vld [vmem:[%s3490_s7 + $0x8] sm:$0xff]  ;;  %s3326_s0 = scalar_lea.vmem [#allocation8], %s2006_s10  ;;  %s3345_s23 = scalar_lea.vmem [#allocation11], %s3514_s27 }
  0x4b   : > { %876 = vmatpush.bf16.msra.mxu0 %v3092_v8  ;;  %v2447_v20 = vld [vmem:[%s3490_s7] sm:$0xff]  ;;  %v2458_v21 = vld [vmem:[#allocation2 + $0x18] sm:$0xff]  ;;  %v2456_v29 = vld [vmem:[#allocation2 + $0x8] sm:$0xff]  ;;  %s3350_s29 = scalar_lea.vmem [#allocation9], %s2006_s10  ;;  %s3394_s26 = scalar_lea.sflag [#allocation10], %s1716_s12 }
  0x4c   : > { %889 = vmatpush.bf16.msra.mxu1 %v3097_v9  ;;  %999 = vmatpush.bf16.msra.mxu3 %v2127_v39  ;;  %v2470_v26 = vld [vmem:[#allocation2 + $0x78] sm:$0xff]  ;;  %v2469_v32 = vld [vmem:[#allocation2 + $0x70] sm:$0xff]  ;;  %v1164_v34 = vld [vmem:[%s3305_s2] sm:$0xff]  ;;  %s1755_s22 = sshll.u32 %s3350_s29, 4  ;;  %s1756_s22 = int_to_ptr.vmem [resolvable:$true] %s1755_s22 }
  0x4d   : > { %v2468_v35 = vld [vmem:[#allocation2 + $0x68] sm:$0xff]  ;;  %v2467_v37 = vld [vmem:[#allocation2 + $0x60] sm:$0xff]  ;;  %v2466_v38 = vld [vmem:[#allocation2 + $0x58] sm:$0xff] }
  0x4e   : > { %987 = vmatpush.bf16.msra.mxu2 %v2115_v42  ;;  %v2464_v40 = vld [vmem:[#allocation2 + $0x48] sm:$0xff]  ;;  %v2463_v47 = vld [vmem:[#allocation2 + $0x40] sm:$0xff]  ;;  %v2298_v52 = vld [vmem:[#allocation5 + $0x70] sm:$0xf] }
  0x4f   : > { %877 = vmatpush.bf16.msra.mxu0 %v3105_v10  ;;  %v1165_v50 = vld [vmem:[%s3305_s2 + $0x8] sm:$0xff]  ;;  %v2486_v53 = vld [vmem:[#allocation5 + $0x74] sm:$0xf0]  ;;  %v2300_v56 = vld [vmem:[#allocation5 + $0x78] sm:$0xf0]  ;;  %s2511_s2 = sshll.u32 %s2991_s1, 4 }
  0x50   : > { %890 = vmatpush.bf16.msra.mxu1 %v3110_v11  ;;  %1000 = vmatpush.bf16.msra.mxu3 %v2119_v45  ;;  %v2299_v55 = vor.u32 %v2486_v53, %v2298_v52  ;;  %v2493_v52 = vld [vmem:[#allocation7 + $0x30] sm:$0xff]  ;;  %s1753_s21 = scalar_lea.hbm %s3500_s17, %s2511_s2 }
  0x51   : > { %s1757_s25 = sshll.u32 %s1753_s21, 4  ;;  %s1758_s25 = int_to_ptr.hbm [resolvable:$true] %s1757_s25 }
  0x52   : > { %988 = vmatpush.bf16.msra.mxu2 %v2107_v48  ;;  %s2713_s24 = sshra.s32 %s1758_s25, 4  ;;  %s2714_s24 = int_to_ptr.hbm [resolvable:$true] %s2713_s24 }
  0x53   : > { %878 = vmatpush.bf16.msra.mxu0 %v3119_v12  ;;  %s2715_s20 = scalar_lea.hbm %s2714_s24, 16  ;;  %p2720_p3 = scmp.lt.s32.totalorder %s2714_s24, %s3500_s17 }
  0x54   : > { %891 = vmatpush.bf16.msra.mxu1 %v3124_v13  ;;  %1001 = vmatpush.bf16.msra.mxu3 %v2111_v51  ;;  %p2716_p0 = scmp.ne.s32.totalorder %s2714_s24, %s2715_s20 }
  0x56   : > { %989 = vmatpush.bf16.msra.mxu2 %v2099_v54  ;;  %p2717_p1 = pnand %p2716_p0, %p3010_p5 }
  0x57   : > { %879 = vmatpush.bf16.msra.mxu0 %v3133_v14 }
  0x58   : > { %892 = vmatpush.bf16.msra.mxu1 %v3140_v15  ;;  %1002 = vmatpush.bf16.msra.mxu3 %v2103_v57  ;;  %p2718_p2 = pneg %p2717_p1 }
  0x5a   : > { %880 = vmatmul.bf16.vlgmr.msra.gmra.mxu0 %v771_v18  ;;  %990 = vmatpush.bf16.msra.mxu2 %v2091_v60  ;;  %v2459_v18 = vld [vmem:[#allocation2 + $0x20] sm:$0xff] }
  0x5b   : > { %1016 = vmatpush.bf16.msrb.mxu0 %v2422_v0  ;;  %893 = vmatmul.bf16.vlgmr.msra.gmra.mxu1 %v772_v19  ;;  %v2432_v0 = vld [vmem:[%s3540_s5 + $0x4] sm:$0xf0]  ;;  %v2602_v19 = vld [vmem:[%s3542_s4] ss:$0 sm:$0xff] }
  0x5c   : > { %1029 = vmatpush.bf16.msrb.mxu1 %v2430_v1  ;;  %v2095_v1 = vor.u32 %v2433_v58, %v2092_v59  ;;  %v2290_v58 = vld [vmem:[#allocation5 + $0x60] sm:$0xf]  ;;  %v2484_v59 = vld [vmem:[#allocation5 + $0x64] sm:$0xf0] }
  0x5e   : > { %1003 = vmatpush.bf16.msra.mxu3 %v2095_v1 }
  0x5f   : > { %1017 = vmatpush.bf16.msrb.mxu0 %v2421_v2  ;;  %v2431_v2 = vld [vmem:[%s3540_s5 + $0x4] sm:$0xf] }
  0x60   : > { %1030 = vmatpush.bf16.msrb.mxu1 %v2429_v3  ;;  %v2084_v3 = vld [vmem:[%s3540_s5 + $0x8] sm:$0xf0]  ;;  %s2719_s5 = scalar_lea.hbm %s3500_s17, 32 }
  0x61   : > { %p2721_p4 = scmp.lt.s32.totalorder %s2719_s5, %s2715_s20 }
  0x63   : > { %1018 = vmatpush.bf16.msrb.mxu0 %v2420_v4  ;;  %v1014_v4 = vpack.c.bf16 %v1012_v61, %v1012_v61  ;;  %v2291_v61 = vor.u32 %v2484_v59, %v2290_v58  ;;  %v2500_v58 = vld [vmem:[#allocation7 + $0x68] sm:$0xff]  ;;  %p2722_p7 = por %p2721_p4, %p2720_p3 }
  0x64   : > { %1031 = vmatpush.bf16.msrb.mxu1 %v2428_v5  ;;  %v1015_v5 = vpack.c.bf16 %v1013_v62, %v1013_v62  ;;  %v2292_v62 = vld [vmem:[#allocation5 + $0x68] sm:$0xf0] }
  0x65   : > { %v2492_v59 = vld [vmem:[#allocation7 + $0x28] sm:$0xff]  ;;  %p2723_p8 = pnand %p2722_p7, %p2718_p2 }
  0x67   : > { %1019 = vmatpush.bf16.msrb.mxu0 %v3079_v6  ;;  %v2083_v6 = vor.u32 %v2432_v0, %v2082_v63  ;;  %v3315_v0 = vld [vmem:[%s3544_s6] sm:$0x3] }
  0x68   : > { %1032 = vmatpush.bf16.msrb.mxu1 %v3084_v7  ;;  %v2087_v7 = vor.u32 %v2431_v2, %v2084_v3  ;;  %v2482_v2 = vld [vmem:[#allocation5 + $0x54] sm:$0xf0]  ;;  %v2481_v3 = vld [vmem:[#allocation5 + $0x54] sm:$0xf] }
  0x69   : > { %991 = vmatpush.bf16.msra.mxu2 %v2083_v6 }
  0x6a   : > { %1004 = vmatpush.bf16.msra.mxu3 %v2087_v7 }
  0x6b   : > { %1020 = vmatpush.bf16.msrb.mxu0 %v3092_v8  ;;  %v2454_v8 = vld [vmem:[%s3490_s7 + $0x38] sm:$0xff] }
  0x6c   : > { %1033 = vmatpush.bf16.msrb.mxu1 %v3097_v9  ;;  %v2453_v9 = vld [vmem:[%s3490_s7 + $0x30] sm:$0xff] }
  0x6d   : > { %1043 = vmatpush.bf16.msrb.mxu2 %v3150_v22 }
  0x6e   : > { %1056 = vmatpush.bf16.msrb.mxu3 %v3167_v28 }
  0x6f   : > { %1021 = vmatpush.bf16.msrb.mxu0 %v3105_v10  ;;  %v2452_v10 = vld [vmem:[%s3490_s7 + $0x28] sm:$0xff] }
  0x70   : > { %1034 = vmatpush.bf16.msrb.mxu1 %v3110_v11  ;;  %v2462_v11 = vld [vmem:[#allocation2 + $0x38] sm:$0xff] }
  0x71   : > { %1044 = vmatpush.bf16.msrb.mxu2 %v3165_v27  ;;  %v2457_v27 = vld [vmem:[#allocation2 + $0x10] sm:$0xff] }
  0x72   : > { %1057 = vmatpush.bf16.msrb.mxu3 %v3182_v33  ;;  %v2455_v33 = vld [vmem:[#allocation2] sm:$0xff] }
  0x73   : > { %1022 = vmatpush.bf16.msrb.mxu0 %v3119_v12  ;;  %v2461_v12 = vld [vmem:[#allocation2 + $0x30] sm:$0xff] }
  0x74   : > { %1035 = vmatpush.bf16.msrb.mxu1 %v3124_v13  ;;  %v2451_v13 = vld [vmem:[%s3490_s7 + $0x20] sm:$0xff] }
  0x75   : > { %1045 = vmatpush.bf16.msrb.mxu2 %v3191_v36  ;;  %v1166_v36 = vpack.c.bf16 %v1164_v34, %v1164_v34  ;;  %v2473_v34 = vld [vmem:[#allocation5 + $0x14] sm:$0xf] }
  0x76   : > { %1058 = vmatpush.bf16.msrb.mxu3 %v2127_v39  ;;  %v2465_v39 = vld [vmem:[#allocation2 + $0x50] sm:$0xff] }
  0x77   : > { %1023 = vmatpush.bf16.msrb.mxu0 %v3133_v14  ;;  %v2460_v14 = vld [vmem:[#allocation2 + $0x28] sm:$0xff] }
  0x78   : > { %1036 = vmatpush.bf16.msrb.mxu1 %v3140_v15  ;;  %v2450_v15 = vld [vmem:[%s3490_s7 + $0x18] sm:$0xff] }
  0x79   : > { %1046 = vmatpush.bf16.msrb.mxu2 %v2115_v42 }
  0x7a   : > { %1024 = vmatmul.bf16.vlgmr.msrb.gmra.mxu0 %v1014_v4  ;;  %1059 = vmatpush.bf16.msrb.mxu3 %v2119_v45 }
  0x7b   : > { %1037 = vmatmul.bf16.vlgmr.msrb.gmra.mxu1 %v1015_v5  ;;  %1138 = vmatpush.bf16.msra.mxu0 %v2454_v8  ;;  %v2284_v5 = vld [vmem:[#allocation5 + $0x58] sm:$0xf0]  ;;  %v901_v8 = vperm.slane %v3315_v0, 1 }
  0x7c   : > { %1300 = vmatpush.bf16.msra.mxu1 %v2462_v11  ;;  %v2479_v11 = vld [vmem:[#allocation5 + $0x44] sm:$0xf] }
  0x7d   : > { %1047 = vmatpush.bf16.msrb.mxu2 %v2107_v48 }
  0x7e   : > { %1060 = vmatpush.bf16.msrb.mxu3 %v2111_v51  ;;  %v1167_v51 = vpack.c.bf16 %v1165_v50, %v1165_v50 }
  0x7f   : > { %1139 = vmatpush.bf16.msra.mxu0 %v2453_v9  ;;  %v2274_v9 = vld [vmem:[#allocation5 + $0x40] sm:$0xf] }
  0x80   : > { %1301 = vmatpush.bf16.msra.mxu1 %v2461_v12 }
  0x81   : > { %1048 = vmatpush.bf16.msrb.mxu2 %v2099_v54  ;;  %v2485_v54 = vld [vmem:[#allocation5 + $0x74] sm:$0xf] }
  0x82   : > { %1061 = vmatpush.bf16.msrb.mxu3 %v2103_v57  ;;  %v2303_v57 = vor.u32 %v2485_v54, %v2300_v56  ;;  %v2604_v56 = vld [vmem:[%s3492_s9] ss:$0 sm:$0xff] }
  0x83   : > { %1140 = vmatpush.bf16.msra.mxu0 %v2452_v10  ;;  %v2480_v10 = vld [vmem:[#allocation5 + $0x44] sm:$0xf0] }
  0x84   : > { %1302 = vmatpush.bf16.msra.mxu1 %v2460_v14  ;;  %v2275_v12 = vor.u32 %v2480_v10, %v2274_v9  ;;  %v2497_v9 = vld [vmem:[#allocation7 + $0x50] sm:$0xff] }
  0x85   : > { %1049 = vmatpush.bf16.msrb.mxu2 %v2091_v60  ;;  %v2483_v60 = vld [vmem:[#allocation5 + $0x64] sm:$0xf] }
  0x86   : > { %1062 = vmatpush.bf16.msrb.mxu3 %v2095_v1  ;;  %v2295_v63 = vor.u32 %v2483_v60, %v2292_v62  ;;  %v2282_v1 = vld [vmem:[#allocation5 + $0x50] sm:$0xf] }
  0x87   : > { %1141 = vmatpush.bf16.msra.mxu0 %v2451_v13  ;;  %v2283_v4 = vor.u32 %v2482_v2, %v2282_v1  ;;  %v2276_v13 = vld [vmem:[#allocation5 + $0x48] sm:$0xf0]  ;;  %v2499_v2 = vld [vmem:[#allocation7 + $0x60] sm:$0xff] }
  0x88   : > { %1303 = vmatpush.bf16.msra.mxu1 %v2459_v18  ;;  %v2279_v14 = vor.u32 %v2479_v11, %v2276_v13 }
  0x89   : > { %1050 = vmatpush.bf16.msrb.mxu2 %v2083_v6  ;;  %v2287_v6 = vor.u32 %v2481_v3, %v2284_v5  ;;  %v2491_v3 = vld [vmem:[#allocation7 + $0x20] sm:$0xff]  ;;  %v2490_v5 = vld [vmem:[#allocation7 + $0x18] sm:$0xff] }
  0x8a   : > { %1063 = vmatpush.bf16.msrb.mxu3 %v2087_v7  ;;  %v900_v7 = vperm.slane %v3315_v0, 0  ;;  %v2498_v0 = vld [vmem:[#allocation7 + $0x58] sm:$0xff] }
  0x8b   : > { %1142 = vmatpush.bf16.msra.mxu0 %v2450_v15 }
  0x8c   : > { %1304 = vmatpush.bf16.msra.mxu1 %v2458_v21 }
  0x8f   : > { %1143 = vmatpush.bf16.msra.mxu0 %v2449_v16 }
  0x90   : > { %1305 = vmatpush.bf16.msra.mxu1 %v2457_v27  ;;  %v2476_v27 = vld [vmem:[#allocation5 + $0x24] sm:$0xf0] }
  0x93   : > { %1144 = vmatpush.bf16.msra.mxu0 %v2448_v17 }
  0x94   : > { %1306 = vmatpush.bf16.msra.mxu1 %v2456_v29 }
  0x97   : > { %1145 = vmatpush.bf16.msra.mxu0 %v2447_v20  ;;  %v2478_v20 = vld [vmem:[#allocation5 + $0x34] sm:$0xf0] }
  0x98   : > { %1307 = vmatpush.bf16.msra.mxu1 %v2455_v33 }
  0x9b   : > { %1308 = vmatmul.bf16.vlgmr.msra.gmra.mxu1 %v1166_v36  ;;  %1442 = vmatpush.bf16.msrb.mxu0 %v2303_v57 }
  0x9f   : > { %1443 = vmatpush.bf16.msrb.mxu0 %v2295_v63 }
  0xa3   : > { %1444 = vmatpush.bf16.msrb.mxu0 %v2287_v6 }
  0xa7   : > { %1445 = vmatpush.bf16.msrb.mxu0 %v2279_v14 }
  0xd7   : > { %v881_v22 = vpop.f32.mrf.mxu0 }
  0xd8   : > { %v894_v23 = vpop.f32.mrf.mxu1  ;;  %v882_v24 = vadd.f32 %v2602_v19, %v881_v22  ;;  %v2477_v22 = vld [vmem:[#allocation5 + $0x34] sm:$0xf] }
  0xda   : > { %v895_v25 = vadd.f32 %v894_v23, %v882_v24  ;;  %v2268_v23 = vld [vmem:[#allocation5 + $0x38] sm:$0xf0] }
  0xdb   : > { %v2271_v24 = vor.u32 %v2477_v22, %v2268_v23  ;;  %v2508_v22 = vld [vmem:[%s3490_s7 + $0x28] sm:$0xff]  ;;  %v2507_v23 = vld [vmem:[%s3490_s7 + $0x20] sm:$0xff] }
  0xdc   : > { %v898_v28 = vpack.c.bf16 %v895_v25, %v895_v25 }
  0xdd   : > { %1446 = vmatpush.bf16.msrb.mxu0 %v2271_v24  ;;  %v1343_v24 = vld [vmem:[%s3496_s13] sm:$0x3] }
  0xde   : > { %992 = vmatmul.bf16.vlgmr.msra.gmra.mxu2 %v898_v28  ;;  %1005 = vmatmul.bf16.vlgmr.msra.gmra.mxu3 %v898_v28  ;;  %v2475_v28 = vld [vmem:[#allocation5 + $0x24] sm:$0xf] }
  0xdf   : > { %v883_v30 = vpop.f32.mrf.mxu0  ;;  %1313 = vmatpush.bf16.msra.mxu2 %v2470_v26  ;;  %1429 = vmatpush.bf16.msra.mxu3 %v2299_v55  ;;  %v2258_v26 = vld [vmem:[#allocation5 + $0x20] sm:$0xf] }
  0xe0   : > { %v896_v31 = vpop.f32.mrf.mxu1  ;;  %v2259_v29 = vor.u32 %v2476_v27, %v2258_v26  ;;  %v2260_v30 = vld [vmem:[#allocation5 + $0x28] sm:$0xf0]  ;;  %v1346_v26 = vperm.slane %v1343_v24, 1 }
  0xe1   : > { %v2250_v31 = vld [vmem:[#allocation5 + $0x10] sm:$0xf]  ;;  %v2263_v33 = vor.u32 %v2475_v28, %v2260_v30 }
  0xe2   : > { %v2505_v28 = vld [vmem:[%s3490_s7 + $0x10] sm:$0xff] }
  0xe3   : > { %1314 = vmatpush.bf16.msra.mxu2 %v2469_v32  ;;  %1430 = vmatpush.bf16.msra.mxu3 %v2291_v61  ;;  %v2474_v32 = vld [vmem:[#allocation5 + $0x14] sm:$0xf0] }
  0xe4   : > { %1447 = vmatpush.bf16.msrb.mxu0 %v2263_v33 }
  0xe7   : > { %1315 = vmatpush.bf16.msra.mxu2 %v2468_v35  ;;  %1431 = vmatpush.bf16.msra.mxu3 %v2283_v4  ;;  %v2252_v35 = vld [vmem:[#allocation5 + $0x18] sm:$0xf0] }
  0xeb   : > { %1316 = vmatpush.bf16.msra.mxu2 %v2467_v37  ;;  %1432 = vmatpush.bf16.msra.mxu3 %v2275_v12 }
  0xef   : > { %1317 = vmatpush.bf16.msra.mxu2 %v2466_v38  ;;  %v2251_v38 = vor.u32 %v2474_v32, %v2250_v31  ;;  %v1345_v31 = vperm.slane %v1343_v24, 0 }
  0xf3   : > { %1318 = vmatpush.bf16.msra.mxu2 %v2465_v39  ;;  %v2255_v39 = vor.u32 %v2473_v34, %v2252_v35 }
  0xf5   : > { %1448 = vmatpush.bf16.msrb.mxu0 %v2255_v39  ;;  %v2504_v39 = vld [vmem:[%s3490_s7 + $0x8] sm:$0xff] }
  0xf7   : > { %v1025_v41 = vpop.f32.mrf.mxu0  ;;  %1319 = vmatpush.bf16.msra.mxu2 %v2464_v40 }
  0xf8   : > { %v1038_v42 = vpop.f32.mrf.mxu1  ;;  %v1026_v43 = vadd.f32 %v2602_v19, %v1025_v41  ;;  %v2266_v19 = vld [vmem:[#allocation5 + $0x30] sm:$0xf]  ;;  %v2242_v41 = vld [vmem:[#allocation5] sm:$0xf] }
  0xf9   : > { %v2267_v21 = vor.u32 %v2478_v20, %v2266_v19  ;;  %v2487_v19 = vld [vmem:[#allocation7] sm:$0xff]  ;;  %v2510_v20 = vld [vmem:[%s3490_s7 + $0x38] sm:$0xff] }
  0xfa   : > { %v1039_v44 = vadd.f32 %v1038_v42, %v1026_v43  ;;  %v2472_v42 = vld [vmem:[#allocation5 + $0x4] sm:$0xf0]  ;;  %v2471_v43 = vld [vmem:[#allocation5 + $0x4] sm:$0xf] }
  0xfb   : > { %1320 = vmatpush.bf16.msra.mxu2 %v2463_v47  ;;  %1433 = vmatpush.bf16.msra.mxu3 %v2267_v21  ;;  %v2603_v47 = vld [vmem:[%s3491_s8] ss:$0 sm:$0xff]  ;;  %v2509_v21 = vld [vmem:[%s3490_s7 + $0x30] sm:$0xff] }
  0xfc   : > { %v1042_v45 = vpack.c.bf16 %v1039_v44, %v1039_v44  ;;  %v1071_v46 = vmul.f32 %v1039_v44, %v1039_v44  ;;  %v2243_v44 = vor.u32 %v2472_v42, %v2242_v41  ;;  %v2606_v41 = vld [vmem:[%s3498_s15] ss:$0 sm:$0xff] }
  0xfe   : > { %1072 = vadd.xlane.f32.xlu0 %v1071_v46  ;;  %1051 = vmatmul.bf16.vlgmr.msrb.gmra.mxu2 %v1042_v45 }
  0xff   : > { %1064 = vmatmul.bf16.vlgmr.msrb.gmra.mxu3 %v1042_v45  ;;  %1146 = vmatmul.bf16.vlgmr.msra.gmra.mxu0 %v1042_v45  ;;  %v1027_v48 = vpop.f32.mrf.mxu0  ;;  %v2244_v45 = vld [vmem:[#allocation5 + $0x8] sm:$0xf0] }
 0x100   : > { %v1040_v49 = vpop.f32.mrf.mxu1  ;;  %1434 = vmatpush.bf16.msra.mxu3 %v2259_v29  ;;  %v2247_v46 = vor.u32 %v2471_v43, %v2244_v45  ;;  %v2502_v48 = vld [vmem:[#allocation7 + $0x78] sm:$0xff] }
 0x101   : > { %v2494_v49 = vld [vmem:[#allocation7 + $0x38] sm:$0xff]  ;;  %1604 = vmatpush.bf16.msrb.mxu2 %v2502_v48 }
 0x102   : > { %1449 = vmatpush.bf16.msrb.mxu0 %v2247_v46  ;;  %1591 = vmatpush.bf16.msrb.mxu1 %v2494_v49 }
 0x104   : > { %1435 = vmatpush.bf16.msra.mxu3 %v2251_v38 }
 0x106   : > { %1592 = vmatpush.bf16.msrb.mxu1 %v2493_v52 }
 0x108   : > { %1436 = vmatpush.bf16.msra.mxu3 %v2243_v44 }
 0x10a   : > { %1593 = vmatpush.bf16.msrb.mxu1 %v2492_v59 }
 0x10c   : > { %1685 = vmatpush.bf16.msrb.mxu3 %v2510_v20 }
 0x10e   : > { %1321 = vmatmul.bf16.vlgmr.msra.gmra.mxu2 %v1167_v51  ;;  %v2501_v51 = vld [vmem:[#allocation7 + $0x70] sm:$0xff]  ;;  %1594 = vmatpush.bf16.msrb.mxu1 %v2491_v3 }
 0x10f   : > { %1605 = vmatpush.bf16.msrb.mxu2 %v2501_v51 }
 0x110   : > { %1686 = vmatpush.bf16.msrb.mxu3 %v2509_v21 }
 0x112   : > { %1595 = vmatpush.bf16.msrb.mxu1 %v2490_v5 }
 0x113   : > { %1606 = vmatpush.bf16.msrb.mxu2 %v2500_v58 }
 0x114   : > { %1687 = vmatpush.bf16.msrb.mxu3 %v2508_v22 }
 0x117   : > { %1607 = vmatpush.bf16.msrb.mxu2 %v2499_v2 }
 0x118   : > { %v3330_v25 = vpop.f32.mrf.mxu1  ;;  %1688 = vmatpush.bf16.msrb.mxu3 %v2507_v23 }
 0x11b   : > { %1608 = vmatpush.bf16.msrb.mxu2 %v2498_v0 }
 0x11f   : > { %1609 = vmatpush.bf16.msrb.mxu2 %v2497_v9 }
 0x120   : > { %v1311_v40 = vpop.f32.mrf.mxu1 }
 0x121   : > { %v2503_v40 = vld [vmem:[%s3490_s7] sm:$0xff] }
 0x161   : > { %v993_v15 = vpop.f32.mrf.mxu2  ;;  %v1006_v16 = vpop.f32.mrf.mxu3 }
 0x162   : > { %v994_v17 = vadd.f32 %v993_v15, %v900_v7  ;;  %v1007_v18 = vadd.f32 %v1006_v16, %v901_v8  ;;  %v2496_v15 = vld [vmem:[#allocation7 + $0x48] sm:$0xff]  ;;  %v2489_v16 = vld [vmem:[#allocation7 + $0x10] sm:$0xff] }
 0x163   : > { %1610 = vmatpush.bf16.msrb.mxu2 %v2496_v15  ;;  %1596 = vmatpush.bf16.msrb.mxu1 %v2489_v16 }
 0x164   : > { %1010 = vst [vmem:[%s3326_s0] sm:$0xff] %v994_v17  ;;  %v2495_v17 = vld [vmem:[#allocation7 + $0x40] sm:$0xff] }
 0x165   : > { %1011 = vst [vmem:[%s3326_s0 + $0x8] sm:$0xff] %v1007_v18  ;;  %v2488_v18 = vld [vmem:[#allocation7 + $0x8] sm:$0xff] }
 0x167   : > { %1611 = vmatpush.bf16.msrb.mxu2 %v2495_v17  ;;  %1597 = vmatpush.bf16.msrb.mxu1 %v2488_v18 }
 0x169   : > { %v995_v36 = vpop.f32.mrf.mxu2  ;;  %v1008_v37 = vpop.f32.mrf.mxu3 }
 0x16b   : > { %1598 = vmatpush.bf16.msrb.mxu1 %v2487_v19 }
 0x171   : > { %v1073_v50 = vpop.xlane.xlu0 %1072 }
 0x172   : > { %v1156_v54 = vmul.f32 %v2603_v47, %v1073_v50 }
 0x17c   : > { %v1147_v53 = vpop.f32.mrf.mxu0 }
 0x17d   : > { %v1151_v55 = vmul.f32 -2.0, %v1147_v53 }
 0x17f   : > { %v1157_v57 = vadd.f32 %v1156_v54, %v1151_v55 }
 0x181   : > { %v1162_v60 = vadd.f32 %v2604_v56, %v1157_v57  ;;  %v1052_v61 = vpop.f32.mrf.mxu2 }
 0x182   : > { %v1053_v62 = vadd.f32 %v1052_v61, %v900_v7  ;;  %v1065_v63 = vpop.f32.mrf.mxu3  ;;  %v2605_v7 = vld [vmem:[%s3494_s11] ss:$0 sm:$0xff] }
 0x183   : > { %v1066_v1 = vadd.f32 %v1065_v63, %v901_v8  ;;  %1163 = vst [vmem:[%s3345_s23] sm:$0xff] %v1162_v60  ;;  %v1310_v10 = vadd.f32 %v2605_v7, %v3330_v25  ;;  %v2506_v25 = vld [vmem:[%s3490_s7 + $0x18] sm:$0xff] }
 0x184   : > { %1069 = vst [vmem:[%s3350_s29] sm:$0xff] %v1053_v62  ;;  %v1149_v4 = vpop.f32.mrf.mxu0  ;;  %1689 = vmatpush.bf16.msrb.mxu3 %v2506_v25 }
 0x185   : > { %1070 = vst [vmem:[%s3350_s29 + $0x8] sm:$0xff] %v1066_v1 }
 0x188   : > { %1690 = vmatpush.bf16.msrb.mxu3 %v2505_v28 }
 0x189   : > { %v1054_v6 = vpop.f32.mrf.mxu2 }
 0x18a   : > { %v1067_v8 = vpop.f32.mrf.mxu3 }
 0x18c   : > { %1691 = vmatpush.bf16.msrb.mxu3 %v2504_v39 }
 0x190   : > { %1692 = vmatpush.bf16.msrb.mxu3 %v2503_v40 }
 0x191   : > { %v1322_v11 = vpop.f32.mrf.mxu2 }
 0x192   : > { %v1323_v12 = vadd.f32 %v1322_v11, %v1310_v10 }
 0x194   : > { %v1326_v13 = vpack.c.bf16 %v1323_v12, %v1323_v12 }
 0x196   : > { %1437 = vmatmul.bf16.vlgmr.msra.gmra.mxu3 %v1326_v13  ;;  %1450 = vmatmul.bf16.vlgmr.msrb.gmra.mxu0 %v1326_v13 }
 0x199   : > { %v1324_v14 = vpop.f32.mrf.mxu2 }
 0x213   : > { %v1451_v27 = vpop.f32.mrf.mxu0 }
 0x214   : > { %v1452_v29 = vadd.f32 %v1451_v27, %v1346_v26 }
 0x216   : > { %v1456_v30 = vmax.f32 %v1452_v29, 0.0 }
 0x218   : > { %v1458_v32 = vpack.c.bf16 %v1456_v30, %v1456_v30 }
 0x219   : > { %v1438_v33 = vpop.f32.mrf.mxu3 }
 0x21a   : > { %v1439_v34 = vadd.f32 %v1438_v33, %v1345_v31  ;;  %1612 = vmatmul.bf16.vlgmr.msrb.gmra.mxu2 %v1458_v32 }
 0x21b   : > { %v1453_v35 = vpop.f32.mrf.mxu0 }
 0x21c   : > { %v1455_v36 = vmax.f32 %v1439_v34, 0.0 }
 0x21e   : > { %v1457_v37 = vpack.c.bf16 %v1455_v36, %v1455_v36 }
 0x220   : > { %1599 = vmatmul.bf16.vlgmr.msrb.gmra.mxu1 %v1457_v37 }
 0x221   : > { %v1440_v38 = vpop.f32.mrf.mxu3 }
 0x29d   : > { %v1600_v42 = vpop.f32.mrf.mxu1  ;;  %v1613_v43 = vpop.f32.mrf.mxu2 }
 0x29e   : > { %v1601_v44 = vadd.f32 %v2606_v41, %v1600_v42 }
 0x2a0   : > { %v1614_v45 = vadd.f32 %v1613_v43, %v1601_v44 }
 0x2a2   : > { %v1620_v46 = vpack.c.bf16 %v1614_v45, %v1614_v45  ;;  %v1617_v47 = vmul.f32 %v1614_v45, %v1614_v45 }
 0x2a4   : > { %1693 = vmatmul.bf16.vlgmr.msrb.gmra.mxu3 %v1620_v46  ;;  %1618 = vadd.xlane.f32.xlu0 %v1617_v47 }
 0x2a5   : > { %v1602_v48 = vpop.f32.mrf.mxu1  ;;  %v1615_v49 = vpop.f32.mrf.mxu2 }
 0x2a6   : > { %2726 = shalt.err (!%p2723_p8)
}
 0x2a7   : > { %2526 = dma.vmem_to_hbm [thread:$0]  (%p3010_p5), %s1756_s22, 256, %s1758_s25, %s3394_s26  }
 0x2a8   : > { %s1738_s4 = scalar_lea.hbm %s3499_s16, %s2511_s2  ;;  %s1740_s27 = sshll.u32 %s3326_s0, 4  ;;  %s1741_s27 = int_to_ptr.vmem [resolvable:$true] %s1740_s27 }
 0x2a9   : > { %s1742_s6 = sshll.u32 %s1738_s4, 4  ;;  %s2408_s5 = sshll.u32 %s2991_s1, 3  ;;  %s1743_s6 = int_to_ptr.hbm [resolvable:$true] %s1742_s6 }
 0x2aa   : > { %s1712_s10 = scalar_lea.sflag [#allocation4], %s3310_s28  ;;  %s2741_s21 = sshra.s32 %s1743_s6, 4  ;;  %s2742_s21 = int_to_ptr.hbm [resolvable:$true] %s2741_s21 }
 0x2ab   : > { %s2743_s24 = scalar_lea.hbm %s2742_s21, 16  ;;  %s2747_s22 = scalar_lea.hbm %s3499_s16, 32 }
 0x2ac   : > { %p2744_p9 = scmp.ne.s32.totalorder %s2742_s21, %s2743_s24  ;;  %p2748_p12 = scmp.lt.s32.totalorder %s2742_s21, %s3499_s16 }
 0x2ad   : > { %p2749_p13 = scmp.lt.s32.totalorder %s2747_s22, %s2743_s24 }
 0x2ae   : > { %p2745_p10 = pnand %p2744_p9, %p3010_p5 }
 0x2af   : > { %p2750_p0 = por %p2749_p13, %p2748_p12 }
 0x2b0   : > { %p2746_p11 = pneg %p2745_p10 }
 0x2b2   : > { %p2751_p1 = pnand %p2750_p0, %p2746_p11 }
 0x2b4   : > { %2754 = shalt.err (!%p2751_p1)
}
 0x2b5   : > { %2525 = dma.vmem_to_hbm [thread:$0]  (%p3010_p5), %s1741_s27, 256, %s1743_s6, %s1712_s10  }
 0x2b6   : > { %s3545_s12 = sld [smem:[#allocation34_spill]]  ;;  %s1769_s20 = sshll.u32 %s3345_s23, 4  ;;  %s1770_s20 = int_to_ptr.vmem [resolvable:$true] %s1769_s20 }
 0x2bc   : > { %s1767_s4 = scalar_lea.hbm %s3545_s12, %s2408_s5  ;;  %s2775_s27 = scalar_lea.hbm %s3545_s12, 16 }
 0x2bd   : > { %s1771_s18 = sshll.u32 %s1767_s4, 4  ;;  %s1772_s18 = int_to_ptr.hbm [resolvable:$true] %s1771_s18 }
 0x2be   : > { %s2769_s21 = sshra.s32 %s1772_s18, 4  ;;  %s2770_s21 = int_to_ptr.hbm [resolvable:$true] %s2769_s21 }
 0x2bf   : > { %s2771_s24 = scalar_lea.hbm %s2770_s21, 8  ;;  %p2776_p7 = scmp.lt.s32.totalorder %s2770_s21, %s3545_s12 }
 0x2c0   : > { %p2772_p2 = scmp.ne.s32.totalorder %s2770_s21, %s2771_s24  ;;  %p2777_p8 = scmp.lt.s32.totalorder %s2775_s27, %s2771_s24 }
 0x2c2   : > { %p2773_p3 = pnand %p2772_p2, %p3010_p5  ;;  %p2778_p9 = por %p2777_p8, %p2776_p7 }
 0x2c4   : > { %p2774_p4 = pneg %p2773_p3 }
 0x2c6   : > { %p2779_p10 = pnand %p2778_p9, %p2774_p4 }
 0x2c8   : > { %2782 = shalt.err (!%p2779_p10)
}
 0x2c9   : > { %2527 = dma.vmem_to_hbm [thread:$0]  (%p3010_p5), %s1770_s20, 128, %s1772_s18, %s3394_s26   ;;  %v2607_v50 = vld [vmem:[%s3491_s8] ss:$0 sm:$0xff] }
 0x2ca   : > { %s3546_s4 = sld [smem:[#allocation35_spill]]  ;;  %v2608_v55 = vld [vmem:[%s3492_s9] ss:$0 sm:$0xff]  ;;  %s3547_s26 = sshll.u32 %s3310_s28, 3 }
 0x2cb   : > { %s703_s20 = scalar_lea.vmem [#allocation12], %s3547_s26  ;;  %s1727_s1 = scalar_lea.sflag [#allocation13], %s3310_s28 }
 0x2cc   : > { %s1783_s18 = sshll.u32 %s703_s20, 4  ;;  %s1784_s18 = int_to_ptr.vmem [resolvable:$true] %s1783_s18 }
 0x2d0   : > { %s1781_s21 = scalar_lea.hbm %s3546_s4, %s2408_s5  ;;  %s2803_s23 = scalar_lea.hbm %s3546_s4, 16 }
 0x2d1   : > { %s1785_s25 = sshll.u32 %s1781_s21, 4  ;;  %s1786_s25 = int_to_ptr.hbm [resolvable:$true] %s1785_s25 }
 0x2d2   : > { %s2797_s5 = sshra.s32 %s1786_s25, 4  ;;  %s2798_s5 = int_to_ptr.hbm [resolvable:$true] %s2797_s5 }
 0x2d3   : > { %s2799_s27 = scalar_lea.hbm %s2798_s5, 8  ;;  %p2804_p0 = scmp.lt.s32.totalorder %s2798_s5, %s3546_s4 }
 0x2d4   : > { %p2800_p11 = scmp.ne.s32.totalorder %s2798_s5, %s2799_s27  ;;  %p2805_p1 = scmp.lt.s32.totalorder %s2803_s23, %s2799_s27 }
 0x2d6   : > { %p2801_p12 = pnand %p2800_p11, %p3010_p5  ;;  %p2806_p2 = por %p2805_p1, %p2804_p0 }
 0x2d8   : > { %p2802_p13 = pneg %p2801_p12 }
 0x2da   : > { %p2807_p3 = pnand %p2806_p2, %p2802_p13 }
 0x317   : > { %v1619_v51 = vpop.xlane.xlu0 %1618 }
 0x318   : > { %v1703_v53 = vmul.f32 %v2607_v50, %v1619_v51 }
 0x327   : > { %v1694_v52 = vpop.f32.mrf.mxu3 }
 0x328   : > { %v1698_v54 = vmul.f32 -2.0, %v1694_v52 }
 0x32a   : > { %v1704_v56 = vadd.f32 %v1703_v53, %v1698_v54 }
 0x32c   : > { %v1709_v57 = vadd.f32 %v2608_v55, %v1704_v56 }
 0x32e   : > { %1710 = vst [vmem:[%s703_s20] sm:$0xff] %v1709_v57 }
 0x32f   : > { %v1696_v58 = vpop.f32.mrf.mxu3 }
 0x330   : > { %2810 = shalt.err (!%p2807_p3)
}
 0x331   : > { %2528 = dma.vmem_to_hbm [thread:$0]  (%p3010_p5), %s1784_s18, 128, %s1786_s25, %s1727_s1  }
 0x332 PF: > { %s3548_s28 = sld [smem:[#allocation21_spill]] }
 0x333   : > { %s3549_s2 = sld [smem:[#allocation19_spill]] }
 0x338   : > { %p2562_p4 = scmp.ge.s32.totalorder %s3548_s28, 2 }
 0x339   : > { %s1797_s24 = sand.u32 1, %s3549_s2  }
 0x33a   : > { %p2544_p7 = pnand %p2562_p4, %p3014_p6  ;;  %s1798_s22 = scalar_lea.sflag [#allocation4], %s1797_s24 }
 0x33c   : > { %p2545_p8 = pneg %p2544_p7 }
 0x33e   : > { %2836 = dma.done.wait (%p2545_p8), %s1798_s22, 256  }
 0x33f   : > { %2838 = vsyncadd (%p2545_p8), %s1798_s22, 4294967040  ;;  %s3551_s26 = sadd.s32 4294967294, %s3548_s28  }
 0x340   : > { %s1807_s20 = sand.u32 1, %s3551_s26  }
 0x341   : > { %s1808_s5 = scalar_lea.sflag [#allocation10], %s1807_s20 }
 0x342   : > { %2840 = dma.done.wait (%p2545_p8), %s1808_s5, 384  }
 0x343   : > { %2842 = vsyncadd (%p2545_p8), %s1808_s5, 4294966912  ;;  %s1828_s3 = scalar_lea.sflag [#allocation13], %s1797_s24 }
 0x344   : > { %2844 = dma.done.wait (%p2545_p8), %s1828_s3, 128  }
 0x345   : > { %2846 = vsyncadd (%p2545_p8), %s1828_s3, 4294967168  ;;  %s3552_s21 = sld [smem:[#allocation22_spill]]  ;;  %s3555_s0 = smov %s2853_s30 }
 0x346   : > { %s3553_s18 = sld [smem:[#allocation20_spill]] }
 0x347   : > { %s3554_s20 = sld [smem:[#allocation23_spill]] }
 0x34b   : > { %p38_p5 = scmp.ge.s32.totalorder %s3552_s21, 4  }
 0x34c   : > { %s3556_s30 = smov %s3553_s18 }
 0x34d   :  { %40 = sbr.rel (!%p38_p5) target bundleno = 21 (0x15), region = 187 }
 0x352   :  { %1834 = vsyncpa [#allocation3], 1 }
 0x353   :  { %1836 = vsyncpa [#allocation3 + $0x1], 1 }
 0x354   :  { %1837 = vsyncpa [#allocation6], 1 }
 0x355   :  { %1838 = vsyncpa [#allocation4], 1 }
 0x356   :  { %1840 = vsyncpa [#allocation4 + $0x1], 1 }
 0x357   :  { %1841 = vsyncpa [#allocation10], 1 }
 0x358   :  { %1843 = vsyncpa [#allocation10 + $0x1], 1 }
 0x359   :  { %1844 = vsyncpa [#allocation13], 1 }
 0x35a   :  { %1846 = vsyncpa [#allocation13 + $0x1], 1 }

</bundles_post_ra>
